<compile_context>
chip_gen: v7x
topology: tpu7x:2x2x1
jax: 0.10.0
libtpu: 0.0.40
codegen_flags: <defaults>
</compile_context>

<pallas_src>
import functools
import math

import jax
import jax.numpy as jnp
from jax.experimental import pallas as pl
from jax.experimental.pallas import tpu as pltpu


def _vmem_capacity_bytes():
    try:
        return int(pltpu.get_tpu_info().vmem_capacity_bytes)
    except Exception:
        return 64 << 20        # conservative fallback (v7x per-TC VMEM)


# ---------------- fused single-pass kernels (whole tensor resident in VMEM) ----------------


def _fused_kbit_kernel(x_ref, o_ref, *, n):
    # 2 <= w_bit <= 8:
    #   w = tanh(x); max_w = max|w|; w = w/2/max_w + 0.5
    #   q = clamp((round(w*n) - 1)/n, 0, 1); out = max_w * (2q - 1)
    xv = x_ref[...].astype(jnp.float32)
    w = jnp.tanh(xv)
    max_w = jnp.max(jnp.abs(w))
    half_inv_max = 0.5 / max_w                  # hoisted: one scalar divide
    q = jnp.clip((jnp.round((w * half_inv_max + 0.5) * n) - 1.0) * (1.0 / n), 0.0, 1.0)
    o_ref[...] = (max_w * (2.0 * q - 1.0)).astype(o_ref.dtype)


def _fused_1bit_kernel(x_ref, o_ref, *, inv_count):
    # w_bit == 1: E = mean(|x|) over the TRUE element count (any padding adds 0);
    # sign(x/E)*E == sign(x)*E for E > 0, so skip the per-element divide.
    xv = x_ref[...].astype(jnp.float32)
    e = jnp.sum(jnp.abs(xv)) * inv_count
    o_ref[...] = (jnp.sign(xv) * e).astype(o_ref.dtype)


# ---------------- tiled pass 1: per-core partial reduction --------------------------------


def _reduce_kernel(x_ref, part_ref, acc_ref, *, op, rows_total, block_rows, steps):
    # Grid: (npart, steps). Core axis 0 is "parallel" (megacore split on v7x); axis 1 walks
    # this core's row blocks. acc_ref is a tiny (1, C) f32 accumulator; per-step work is one
    # sublane reduce (free relative to the HBM-bound DMA). Out-of-bound rows of the last
    # block are masked with an iota row mask, so the wrapper never pads rows.
    c = pl.program_id(0)
    i = pl.program_id(1)

    @pl.when(i == 0)
    def _():
        acc_ref[...] = jnp.zeros_like(acc_ref)      # identity for both max(|x|) and sum(|x|)

    blk = c * steps + i
    valid_rows = rows_total - blk * block_rows
    row_ids = jax.lax.broadcasted_iota(jnp.int32, x_ref.shape, 0)
    xa = jnp.abs(x_ref[...].astype(jnp.float32))
    xa = jnp.where(row_ids < valid_rows, xa, 0.0)   # kill garbage rows of the boundary block

    if op == "max":
        acc_ref[...] = jnp.maximum(acc_ref[...], jnp.max(xa, axis=0, keepdims=True))
    else:  # "sum"
        acc_ref[...] = acc_ref[...] + jnp.sum(xa, axis=0, keepdims=True)

    @pl.when(i == steps - 1)
    def _():
        if op == "max":
            # tanh is odd + monotone: max|tanh(x)| == tanh(max|x|); apply tanh once to the
            # tiny (1, C) accumulator instead of to the whole tensor in this pass.
            r = jnp.max(jnp.tanh(acc_ref[...]))
        else:
            r = jnp.sum(acc_ref[...])
        part_ref[...] = jnp.full((8, 128), r, jnp.float32)   # this core's partial tile


# ---------------- tiled pass 2: elementwise quantization ----------------------------------


def _combine_partials(part_ref, npart, combine):
    vals = [jnp.max(part_ref[pl.ds(8 * p, 8), :]) for p in range(npart)]
    r = vals[0]
    for v in vals[1:]:
        r = combine(r, v)
    return r


def _quant_kbit_kernel(part_ref, x_ref, o_ref, *, n, npart):
    max_w = _combine_partials(part_ref, npart, jnp.maximum)   # == max|tanh(x)| globally
    half_inv_max = 0.5 / max_w                  # once per block, not per element
    w = jnp.tanh(x_ref[...].astype(jnp.float32))
    q = jnp.clip((jnp.round((w * half_inv_max + 0.5) * n) - 1.0) * (1.0 / n), 0.0, 1.0)
    o_ref[...] = (max_w * (2.0 * q - 1.0)).astype(o_ref.dtype)


def _quant_1bit_kernel(part_ref, x_ref, o_ref, *, inv_count, npart):
    e = _combine_partials(part_ref, npart, lambda a, b: a + b) * inv_count
    xv = x_ref[...].astype(jnp.float32)
    o_ref[...] = (jnp.sign(xv) * e).astype(o_ref.dtype)   # sign(x/e)*e == sign(x)*e for e>0


# ---------------- wrapper -------------------------------------------------------------------


def weight_quantize(x, w_bit, *,
                    block_target_bytes=4 << 20,     # ~4 MiB f32 blocks amortize per-step cost
                    fused_limit_bytes=None,         # None -> generation-aware default
                    force_cols=None,                # test knob
                    split_reduce=None):             # None -> auto megacore split of pass 1
    """Pallas implementation of weight_quantize_fn(w_bit).forward(x) (export=False)."""
    assert w_bit <= 8 or w_bit == 32
    if w_bit == 32:
        return x  # identity

    orig_shape = x.shape
    orig_dtype = x.dtype
    n_elem = math.prod(orig_shape)

    cap = _vmem_capacity_bytes()
    vmem_limit = int(min(96 << 20, (cap * 3) // 4))          # 48 MiB on v7x, 96 MiB on v5e/v6e
    fused_limit = (vmem_limit // 5) if fused_limit_bytes is None else fused_limit_bytes

    # ---- lane-dense (R, C) view; avoid wrapper-side copies wherever possible ----
    if (force_cols is None and x.ndim == 2 and x.shape[-1] % 128 == 0
            and 128 <= x.shape[-1] <= 4096):
        xp = x                                               # already lane-dense: zero copies
        R, C = x.shape
        padded = False
    else:
        C = force_cols if force_cols is not None else next(
            (c for c in (512, 256, 128) if n_elem % c == 0), 128)
        pad = (-n_elem) % C
        padded = pad > 0
        xf = x.reshape(-1)
        if padded:
            xf = jnp.pad(xf, (0, pad))                       # < C elems, only when unavoidable
        R = (n_elem + pad) // C
        xp = xf.reshape(R, C)

    if R * C * 4 <= fused_limit:
        # ---- fused VMEM-resident single pass: 1 HBM read + 1 HBM write ----
        if w_bit == 1:
            kern = functools.partial(_fused_1bit_kernel, inv_count=1.0 / n_elem)
        else:
            kern = functools.partial(_fused_kbit_kernel, n=float(2 ** w_bit))
        out = pl.pallas_call(
            kern,
            out_shape=jax.ShapeDtypeStruct((R, C), orig_dtype),
            compiler_params=pltpu.CompilerParams(vmem_limit_bytes=vmem_limit),
        )(xp)
    else:
        # ---- tiled two-pass path ----
        BR = max(8, min(int(block_target_bytes) // (4 * C), R) // 8 * 8)
        total = -(-R // BR)                                  # cdiv; last block masked in-kernel
        if split_reduce is None:
            split = (total % 2 == 0) and (total >= 4)
        else:
            split = bool(split_reduce) and (total % 2 == 0)
        npart = 2 if split else 1
        steps = total // npart

        op = "sum" if w_bit == 1 else "max"
        red = functools.partial(_reduce_kernel, op=op, rows_total=R,
                                block_rows=BR, steps=steps)
        partials = pl.pallas_call(
            red,
            grid=(npart, steps),
            in_specs=[pl.BlockSpec((BR, C), lambda c, i: (c * steps + i, 0))],
            out_specs=pl.BlockSpec((8, 128), lambda c, i: (c, 0)),
            out_shape=jax.ShapeDtypeStruct((npart * 8, 128), jnp.float32),
            scratch_shapes=[pltpu.VMEM((1, C), jnp.float32)],
            compiler_params=pltpu.CompilerParams(
                dimension_semantics=("parallel", "arbitrary"),
                vmem_limit_bytes=vmem_limit),
        )(xp)

        if w_bit == 1:
            ew = functools.partial(_quant_1bit_kernel, inv_count=1.0 / n_elem, npart=npart)
        else:
            ew = functools.partial(_quant_kbit_kernel, n=float(2 ** w_bit), npart=npart)
        out = pl.pallas_call(
            ew,
            grid=(total,),
            in_specs=[pl.BlockSpec((npart * 8, 128), lambda i: (0, 0)),
                      pl.BlockSpec((BR, C), lambda i: (i, 0))],
            out_specs=pl.BlockSpec((BR, C), lambda i: (i, 0)),
            out_shape=jax.ShapeDtypeStruct((R, C), orig_dtype),
            compiler_params=pltpu.CompilerParams(
                dimension_semantics=("parallel",),
                vmem_limit_bytes=vmem_limit),
        )(partials, xp)

    if padded:
        return out.reshape(-1)[:n_elem].reshape(orig_shape)
    return out.reshape(orig_shape)


# ---------------- pure-JAX reference (mirrors the PyTorch forward) -------------------------


def ref_weight_quantize(x, w_bit):
    if w_bit == 32:
        return x
    if w_bit == 1:
        e = jnp.mean(jnp.abs(x))
        return jnp.sign(x / e) * e
    n = float(2 ** w_bit)
    w = jnp.tanh(x)
    max_w = jnp.max(jnp.abs(w))
    w = w / 2.0 / max_w + 0.5
    q = jnp.clip((jnp.round(w * n) - 1.0) / n, 0.0, 1.0)
    return max_w * (2.0 * q - 1.0)


def _check(out, ref, x, w_bit, tag):
    assert out.shape == x.shape and out.dtype == x.dtype, tag
    err = jnp.abs(out.astype(jnp.float32) - ref.astype(jnp.float32))
    max_err = float(jnp.max(err))
    if w_bit in (1, 32):
        assert max_err < 1e-5, f"{tag}: max abs err {max_err}"
    else:
        # f32 reassociation can flip jnp.round on an exact boundary by one quantization
        # level; tolerate at most a couple of such flips (tolerance-based, not bit-exact).
        lvl = 2.0 * float(jnp.max(jnp.abs(jnp.tanh(x)))) / float(2 ** w_bit)
        nbad = int(jnp.sum(err > 1e-5))
        assert max_err <= lvl + 1e-5 and nbad <= 2, \
            f"{tag}: max abs err {max_err}, boundary flips {nbad}"


if __name__ == "__main__":
    k1, k2, k3 = jax.random.split(jax.random.PRNGKey(0), 3)
    # synthetic "weight" tensors in NCHW-style layouts
    x1 = jax.random.normal(k1, (2, 4, 16, 16), dtype=jnp.float32)   # 2048 elems (lane-clean)
    x2 = jax.random.normal(k2, (3, 5, 7, 11), dtype=jnp.float32)    # 1155 elems (ragged)
    x3 = jax.random.normal(k3, (8, 8, 16, 16), dtype=jnp.float32)   # multi-block tiled case

    # knobs that force the tiled two-pass path with several small blocks on tiny tensors
    tiled_kwargs = dict(fused_limit_bytes=0, force_cols=128, block_target_bytes=8 * 128 * 4)

    for name, x in (("x1", x1), ("x2", x2), ("x3", x3)):
        for w_bit in (4, 2, 1, 32):
            ref = jax.block_until_ready(ref_weight_quantize(x, w_bit))

            # default path (fused VMEM-resident kernel for these small tensors)
            out = jax.block_until_ready(weight_quantize(x, w_bit))
            _check(out, ref, x, w_bit, f"{name} fused w_bit={w_bit}")

            # forced tiled two-pass path (boundary-row masking on x2, auto core-split on x3)
            if name in ("x2", "x3"):
                out_t = jax.block_until_ready(weight_quantize(x, w_bit, **tiled_kwargs))
                _check(out_t, ref, x, w_bit, f"{name} tiled w_bit={w_bit}")

    # explicitly exercise the 2-way pass-1 split (megacore path) on a small tensor
    for w_bit in (4, 1):
        ref = jax.block_until_ready(ref_weight_quantize(x1, w_bit))
        out_s = jax.block_until_ready(
            weight_quantize(x1, w_bit, split_reduce=True, **tiled_kwargs))
        _check(out_s, ref, x1, w_bit, f"x1 split w_bit={w_bit}")

    print("KERNEL_OK")
</pallas_src>

<mosaic_0001>
module attributes {stable_mosaic.version = 11 : i64} {
  func.func @_fused_kbit_kernel(%arg0: memref<4x512xf32, #tpu.memory_space<vmem>>, %arg1: memref<4x512xf32, #tpu.memory_space<vmem>>) attributes {dimension_semantics = [], scalar_prefetch = 0 : i64, scratch_operands = 0 : i64, tpu.core_type = #tpu.core_type<tc>} {
    %c0 = arith.constant 0 : index
    %c0_0 = arith.constant 0 : index
    %0 = vector.load %arg0[%c0, %c0_0] : memref<4x512xf32, #tpu.memory_space<vmem>>, vector<4x512xf32>
    %1 = math.tanh %0 : vector<4x512xf32>
    %2 = math.absf %1 : vector<4x512xf32>
    %3 = vector.shape_cast %2 : vector<4x512xf32> to vector<1x4x512xf32>
    %cst = arith.constant dense<0xFF800000> : vector<1xf32>
    %4 = vector.multi_reduction <maximumf>, %3, %cst [1, 2] : vector<1x4x512xf32> to vector<1xf32>
    %5 = vector.shape_cast %4 : vector<1xf32> to vector<1x1x1xf32>
    %6 = vector.extract %5[0, 0, 0] : f32 from vector<1x1x1xf32>
    %cst_1 = arith.constant 5.000000e-01 : f32
    %7 = arith.divf %cst_1, %6 : f32
    %8 = vector.broadcast %7 : f32 to vector<4x512xf32>
    %9 = arith.mulf %1, %8 : vector<4x512xf32>
    %cst_2 = arith.constant 5.000000e-01 : f32
    %10 = vector.broadcast %cst_2 : f32 to vector<4x512xf32>
    %11 = arith.addf %9, %10 : vector<4x512xf32>
    %cst_3 = arith.constant 1.600000e+01 : f32
    %12 = vector.broadcast %cst_3 : f32 to vector<4x512xf32>
    %13 = arith.mulf %11, %12 : vector<4x512xf32>
    %14 = math.roundeven %13 : vector<4x512xf32>
    %cst_4 = arith.constant 1.000000e+00 : f32
    %15 = vector.broadcast %cst_4 : f32 to vector<4x512xf32>
    %16 = arith.subf %14, %15 : vector<4x512xf32>
    %cst_5 = arith.constant 6.250000e-02 : f32
    %17 = vector.broadcast %cst_5 : f32 to vector<4x512xf32>
    %18 = arith.mulf %16, %17 : vector<4x512xf32>
    %cst_6 = arith.constant 0.000000e+00 : f32
    %cst_7 = arith.constant 1.000000e+00 : f32
    %19 = vector.broadcast %cst_6 : f32 to vector<4x512xf32>
    %20 = arith.maximumf %19, %18 : vector<4x512xf32>
    %21 = vector.broadcast %cst_7 : f32 to vector<4x512xf32>
    %22 = arith.minimumf %21, %20 : vector<4x512xf32>
    %cst_8 = arith.constant 2.000000e+00 : f32
    %23 = vector.broadcast %cst_8 : f32 to vector<4x512xf32>
    %24 = arith.mulf %23, %22 : vector<4x512xf32>
    %cst_9 = arith.constant 1.000000e+00 : f32
    %25 = vector.broadcast %cst_9 : f32 to vector<4x512xf32>
    %26 = arith.subf %24, %25 : vector<4x512xf32>
    %27 = vector.broadcast %6 : f32 to vector<4x512xf32>
    %28 = arith.mulf %27, %26 : vector<4x512xf32>
    %c0_10 = arith.constant 0 : index
    %c0_11 = arith.constant 0 : index
    %29 = vector.load %arg1[%c0_10, %c0_11] : memref<4x512xf32, #tpu.memory_space<vmem>>, vector<4x512xf32>
    tpu.vector_store %arg1[%c0_10, %c0_11], %28 {strides = array<i32>} : memref<4x512xf32, #tpu.memory_space<vmem>>, vector<4x512xf32>,
    return
  }
}

</mosaic_0001>

<bundles_post_ra>
// kernel: tpu_custom_call.1
= control target key start
LH: loop header
LB: loop body
LE: loop exit
PB: predicated region body
PF: predicated region fallthrough
CT: control target
= control target key end

     0   :  { %6 = vsyncpa [#allocation3], 0  ;;  %s197_s0 = inlined_call_operand.hbm [shape: f32[4,512], index: 0, kind: input, shape index: {}]   ;;  %s198_s1 = inlined_call_operand.hbm [shape: f32[4,512], index: 1, kind: output, shape index: {}]  }
   0x1   :  { %7 = vsyncpa [#allocation4], 0  ;;  %s161_s6 = smov [#allocation2]   ;;  %s113_s10 = scalar_lea.hbm %s197_s0, 256 }
   0x2   :  { %s14_s7 = sshll.u32 %s161_s6, 4  ;;  %p114_p0 = scmp.ne.s32.totalorder %s197_s0, %s113_s10  ;;  %s15_s7 = int_to_ptr.vmem [resolvable:$true] %s14_s7 }
   0x3   :  { %p117_p1 = scmp.lt.u32.totalorder %s113_s10, %s197_s0 }
   0x5   :  { %p119_p2 = pnand %p117_p1, %p114_p0 }
   0x7   :  { %122 = shalt.err (!%p119_p2)
}
   0x8   :  { %s123_s15 = scalar_lea.vmem %s15_s7, 256  ;;  %p128_p4 = scmp.lt.s32.totalorder %s15_s7, %s15_s7 }
   0x9   :  { %p124_p3 = scmp.ne.s32.totalorder %s15_s7, %s123_s15  ;;  %p129_p5 = scmp.lt.s32.totalorder %s123_s15, %s123_s15 }
   0xb   :  { %p130_p6 = por %p129_p5, %p128_p4 }
   0xd   :  { %p131_p7 = pnand %p130_p6, %p124_p3 }
   0xf   :  { %134 = shalt.err (!%p131_p7)
}
  0x10   :  { %17 = dma.hbm_to_vmem [thread:$0]  %s197_s0, 256, %s15_s7, [#allocation3]  }
  0x11   :  { %157 = dma.done.wait [#allocation3], 256  }
  0x12   :  { %158 = vsyncadd [#allocation3], 4294967040  ;;  %v21_v0 = vld [vmem:[#allocation2] sm:$0xff]  ;;  %v22_v1 = vld [vmem:[#allocation2 + $0x8] sm:$0xff]  ;;  %vm33_vm0 = vcmask 1043456   ;;  %s162_s20 = smov [#allocation5]  }
  0x13   :  { %107 = vtanh.f32 %v21_v0  ;;  %s86_s21 = sshll.u32 %s162_s20, 4  ;;  %s87_s21 = int_to_ptr.vmem [resolvable:$true] %s86_s21 }
  0x14   :  { %109 = vtanh.f32 %v22_v1  ;;  %s135_s22 = scalar_lea.vmem %s87_s21, 256  ;;  %p140_p9 = scmp.lt.s32.totalorder %s87_s21, %s87_s21 }
  0x15   :  { %p136_p8 = scmp.ne.s32.totalorder %s87_s21, %s135_s22  ;;  %p141_p10 = scmp.lt.s32.totalorder %s135_s22, %s135_s22 }
  0x17   :  { %p142_p11 = por %p141_p10, %p140_p9 }
  0x19   :  { %p143_p12 = pnand %p142_p11, %p136_p8 }
  0x1d   :  { %v108_v2 = vpop.eup %107 }
  0x1e   :  { %v110_v3 = vpop.eup %109  ;;  %v25_v4 = vand.u32 2147483647, %v108_v2 }
  0x1f   :  { %v26_v5 = vand.u32 2147483647, %v110_v3 }
  0x20   :  { %v29_v6 = vcombine.high %v25_v4, %v25_v4  ;;  %v34_v7 = vsel %vm33_vm0, %v25_v4, -inf }
  0x21   :  { %v30_v8 = vcombine.high %v26_v5, %v26_v5  ;;  %v36_v9 = vsel %vm33_vm0, %v26_v5, -inf }
  0x22   :  { %v35_v10 = vsel %vm33_vm0, %v29_v6, -inf }
  0x23   :  { %v37_v11 = vsel %vm33_vm0, %v30_v8, -inf  ;;  %v38_v12 = vmax.f32 %v34_v7, %v35_v10 }
  0x24   :  { %v39_v13 = vmax.f32 %v36_v9, %v37_v11 }
  0x26   :  { %v40_v14 = vmax.f32 %v38_v12, %v39_v13 }
  0x28   :  { %41 = vmax.xlane.f32.xlu0 %v40_v14 }
  0xb5   :  { %v42_v15 = vpop.xlane.xlu0 %41 }
  0xb6   :  { %v43_v16 = vrot.slane %v42_v15, 4 }
  0xb8   :  { %v44_v17 = vmax.f32 %v42_v15, %v43_v16 }
  0xba   :  { %v45_v18 = vrot.slane %v44_v17, 2 }
  0xbc   :  { %v46_v19 = vmax.f32 %v44_v17, %v45_v18 }
  0xbe   :  { %v47_v20 = vrot.slane %v46_v19, 1 }
  0xc0   :  { %v48_v21 = vmax.f32 %v46_v19, %v47_v20 }
  0xc2   :  { %99 = vpush %v48_v21 }
  0xf3   :  { %s100_s0 = spop %99 }
  0xf4   :  { %v50_v22 = vstv %s100_s0 }
  0xf5   :  { %111 = vrcp.f32 %v50_v22 }
  0xff   :  { %v112_v23 = vpop.eup %111 }
 0x100   :  { %101 = vpush %v112_v23 }
 0x131   :  { %s102_s18 = spop %101 }
 0x132   :  { %s53_s19 = smul.f32 0.5, %s102_s18 }
 0x134   :  { %v54_v24 = vstv %s53_s19 }
 0x135   :  { %v55_v25 = vmul.f32 %v108_v2, %v54_v24  ;;  %v56_v26 = vmul.f32 %v110_v3, %v54_v24 }
 0x137   :  { %v57_v27 = vadd.f32 0.5, %v55_v25  ;;  %v58_v28 = vadd.f32 0.5, %v56_v26 }
 0x139   :  { %v59_v29 = vmul.f32 16.0, %v57_v27  ;;  %v60_v30 = vmul.f32 16.0, %v58_v28 }
 0x13b   :  { %v103_v31 = vround.rtne.f32 %v59_v29  ;;  %v104_v32 = vround.rtne.f32 %v60_v30 }
 0x13d   :  { %v95_v33 = vadd.f32 -1.0, %v103_v31  ;;  %v96_v34 = vadd.f32 -1.0, %v104_v32 }
 0x13f   :  { %v65_v35 = vmul.f32 0.0625, %v95_v33  ;;  %v66_v36 = vmul.f32 0.0625, %v96_v34 }
 0x141   :  { %v67_v37 = vmax.f32 %v65_v35, 0.0  ;;  %v68_v38 = vmax.f32 %v66_v36, 0.0 }
 0x143   :  { %v69_v39 = vmin.f32 %v67_v37, 1.0  ;;  %v70_v40 = vmin.f32 %v68_v38, 1.0 }
 0x145   :  { %v71_v41 = vmul.f32 2.0, %v69_v39  ;;  %v72_v42 = vmul.f32 2.0, %v70_v40 }
 0x147   :  { %v97_v43 = vadd.f32 -1.0, %v71_v41  ;;  %v98_v44 = vadd.f32 -1.0, %v72_v42 }
 0x149   :  { %v76_v45 = vmul.f32 %v97_v43, %v50_v22  ;;  %v77_v46 = vmul.f32 %v98_v44, %v50_v22 }
 0x14b   :  { %78 = vst [vmem:[#allocation5] sm:$0xff] %v76_v45  ;;  %79 = vst [vmem:[#allocation5 + $0x8] sm:$0xff] %v77_v46 }
 0x14c   :  { %146 = shalt.err (!%p143_p12)
}
 0x14d   :  { %s147_s25 = scalar_lea.hbm %s198_s1, 256 }
 0x14e   :  { %p148_p13 = scmp.ne.s32.totalorder %s198_s1, %s147_s25  ;;  %p151_p0 = scmp.lt.u32.totalorder %s147_s25, %s198_s1 }
 0x150   :  { %p153_p1 = pnand %p151_p0, %p148_p13 }
 0x152   :  { %156 = shalt.err (!%p153_p1)
}
 0x153   :  { %89 = dma.vmem_to_hbm [thread:$0]  %s87_s21, 256, %s198_s1, [#allocation4]  }
 0x154   :  { %159 = dma.done.wait [#allocation4], 256  }
 0x155   :  { %160 = vsyncadd [#allocation4], 4294967040 }
 0x156   :  { %93 = vsyncpa [#allocation3], 1 }
 0x157   :  { %94 = vsyncpa [#allocation4], 1 }

</bundles_post_ra>
